<compile_context>
chip_gen: v7x
topology: tpu7x:2x2x1
jax: 0.10.0
libtpu: 0.0.40
codegen_flags: <defaults>
</compile_context>

<pallas_src>
import jax
import jax.numpy as jnp
from jax import lax
from jax.experimental import pallas as pl
from jax.experimental.pallas import tpu as pltpu

S_HIDDEN_SIZE = 40  # s_hidden_size in the reference script


def _make_rnn_linear_kernel(B, T, I, H, O):
    """Fused tanh-RNN recurrence + output Linear (shapes baked in as constants).

    Kernel refs:
      x_ref    : (B*T, I)    batch-major flattened input (row = b*T + t)
      h0_ref   : (B, H)      initial hidden state
      wrnn_ref : (I+H+1, H)  packed [W_ih^T ; W_hh^T ; b_ih+b_hh]
      wout_ref : (H+1, O)    packed [W_lin^T ; b_lin]
      out_ref  : (B*T, O)    batch-major linear output (row = b*T + t)
      hout_ref : (B, H)      final hidden state
      hs_ref   : (B, T, H)   VMEM scratch: batch-major per-step hidden states
    """

    def kernel(x_ref, h0_ref, wrnn_ref, wout_ref, out_ref, hout_ref, hs_ref):
        # One-time weight/bias loads (static ref slices, off the serial chain).
        wih = wrnn_ref[0:I, :]                    # (I, H) = W_ih^T
        whh = wrnn_ref[I:I + H, :]                # (H, H) = W_hh^T
        bias = wrnn_ref[I + H:I + H + 1, :]       # (1, H) = b_ih + b_hh

        # (1) Hoisted input projection: one batched matmul, off the serial chain.
        xw = jnp.dot(x_ref[...], wih, preferred_element_type=jnp.float32) + bias
        xw3 = xw.reshape(B, T, H)                 # layout-identical reshape

        # TODO(synk): hold `whh` in MXU weight regs via pltpu.matmul_push_rhs /
        # matmul_acc_lhs / matmul_pop (and/or cast the loop-resident RHS to bf16
        # with f32 accumulation) to cut per-step MXU push latency on the serial
        # chain; kept plain f32 jnp.dot here to match PyTorch f32 numerics.

        # (2) Serial recurrence, statically unrolled (static t -> static slices,
        #     no dynamic indexing). Only dot + add + tanh sit on the critical
        #     chain; the xw3 reads don't depend on h and the hs stores are not
        #     read until after the loop.
        h = h0_ref[...].astype(jnp.float32)
        for t in range(T):
            pre = xw3[:, t, :] + jnp.dot(h, whh,
                                         preferred_element_type=jnp.float32)
            h = jnp.tanh(pre)
            hs_ref[:, t:t + 1, :] = h[:, None, :]   # batch-major stash
        hout_ref[...] = h.astype(hout_ref.dtype)

        # (3) Hoisted output Linear: one (B*T, H) x (H, O) matmul and one
        #     contiguous slab store; rows already in b*T + t order, so the
        #     wrapper needs no transpose.
        wlin = wout_ref[0:H, :]                   # (H, O) = W_lin^T
        blin = wout_ref[H:H + 1, :]               # (1, O)
        hs_bm = hs_ref[...].reshape(B * T, H)     # layout-identical reshape
        out_ref[...] = (jnp.dot(hs_bm, wlin, preferred_element_type=jnp.float32)
                        + blin).astype(out_ref.dtype)

    return kernel


def pack_params(params):
    """One-time parameter packing, kept OUT of the per-call path.

    Returns two small operands so the kernel takes 4 inputs instead of 7 and
    no per-call weight transposes are emitted.
    """
    H = params["w_hh"].shape[0]
    w_rnn = jnp.concatenate(
        [params["w_ih"].T,                                   # (I, H)
         params["w_hh"].T,                                   # (H, H)
         (params["b_ih"] + params["b_hh"]).reshape(1, H)],   # (1, H)
        axis=0)
    w_out = jnp.concatenate(
        [params["w_lin"].T,                                  # (H, O)
         params["b_lin"].reshape(1, -1)],                    # (1, O)
        axis=0)
    return {"w_rnn": w_rnn, "w_out": w_out}


def net_forward(x, hidden_prev, packed):
    """Replicates Net.forward.

    x           : (B, T, I)  batch_first, float32
    hidden_prev : (1, B, H)  float32
    packed      : output of pack_params (pre-packed weights)
    returns     : (out, hidden) with out (1, B*T, O), hidden (1, B, H)
    """
    B, T, I = x.shape
    Hp1, O = packed["w_out"].shape
    H = Hp1 - 1

    x_flat = x.reshape(B * T, I)   # pure reshape, zero-cost (batch-major rows)
    h0 = hidden_prev[0]            # (B, H)

    vmem = pl.BlockSpec(memory_space=pltpu.MemorySpace.VMEM)
    # Whole problem (inputs, weights, scratch, outputs) is a few tens of KiB:
    # fully VMEM-resident, no grid / tiling needed on any TPU generation.
    # TODO(synk): on v7x (2 TensorCores), add grid=(num_cores,) with
    # dimension_semantics=("parallel",) to split the batch across cores; it is
    # a loss on v5e/v6e (1 TC), so it must be gated on chip generation.
    out2d, h_out = pl.pallas_call(
        _make_rnn_linear_kernel(B, T, I, H, O),
        out_shape=(jax.ShapeDtypeStruct((B * T, O), x.dtype),
                   jax.ShapeDtypeStruct((B, H), x.dtype)),
        in_specs=[vmem] * 4,
        out_specs=(vmem, vmem),
        scratch_shapes=[pltpu.VMEM((B, T, H), jnp.float32)],  # hidden states
    )(x_flat, h0, packed["w_rnn"], packed["w_out"])

    # PyTorch: out (B, T, H) -> view(-1, 40) -> Linear -> unsqueeze(0).
    # Kernel already emits batch-major (B*T, O); only free reshapes remain.
    out = out2d[None, :, :]        # (1, B*T, O)
    hidden = h_out[None, :, :]     # (1, B, H)
    return out, hidden


def net_forward_ref(x, hidden_prev, params):
    """Pure-JAX reference (mirrors PyTorch semantics) for a correctness check."""
    B, T, I = x.shape

    def step(h, x_t):
        h_new = jnp.tanh(x_t @ params["w_ih"].T + h @ params["w_hh"].T
                         + params["b_ih"] + params["b_hh"])
        return h_new, h_new

    h_final, hs = lax.scan(step, hidden_prev[0], jnp.transpose(x, (1, 0, 2)))
    out_bt = jnp.transpose(hs, (1, 0, 2)).reshape(B * T, -1)   # batch-major rows
    out = out_bt @ params["w_lin"].T + params["b_lin"]
    return out[None], h_final[None]


def init_params(key, input_size, hidden_size, output_size):
    k = jax.random.split(key, 6)
    std = 0.001  # nn.init.normal_(p, mean=0.0, std=0.001) on all RNN params
    return {
        "w_ih": std * jax.random.normal(k[0], (hidden_size, input_size), jnp.float32),
        "w_hh": std * jax.random.normal(k[1], (hidden_size, hidden_size), jnp.float32),
        "b_ih": std * jax.random.normal(k[2], (hidden_size,), jnp.float32),
        "b_hh": std * jax.random.normal(k[3], (hidden_size,), jnp.float32),
        # Linear keeps a simple synthetic init (differs from PyTorch default;
        # fine for forward-pass semantics).
        "w_lin": 0.1 * jax.random.normal(k[4], (output_size, hidden_size), jnp.float32),
        "b_lin": 0.1 * jax.random.normal(k[5], (output_size,), jnp.float32),
    }


if __name__ == "__main__":
    B, T = 2, 8           # batch, sequence length
    INPUT_SIZE = 16
    HIDDEN_SIZE = S_HIDDEN_SIZE   # 40
    OUTPUT_SIZE = 8

    key = jax.random.PRNGKey(0)
    kx, kh, kp = jax.random.split(key, 3)

    x = jax.random.normal(kx, (B, T, INPUT_SIZE), jnp.float32)
    hidden_prev = jax.random.normal(kh, (1, B, HIDDEN_SIZE), jnp.float32)
    params = init_params(kp, INPUT_SIZE, HIDDEN_SIZE, OUTPUT_SIZE)

    # Parameter packing happens once, outside the per-call forward path.
    packed = pack_params(params)
    packed = jax.tree_util.tree_map(jax.block_until_ready, packed)

    out, hidden = jax.jit(net_forward)(x, hidden_prev, packed)
    jax.block_until_ready((out, hidden))

    assert out.shape == (1, B * T, OUTPUT_SIZE), out.shape
    assert hidden.shape == (1, B, HIDDEN_SIZE), hidden.shape

    out_ref, hidden_ref = net_forward_ref(x, hidden_prev, params)
    assert jnp.allclose(out, out_ref, atol=1e-5, rtol=1e-4), "output mismatch"
    assert jnp.allclose(hidden, hidden_ref, atol=1e-5, rtol=1e-4), "hidden mismatch"

    print("KERNEL_OK")
</pallas_src>

<mosaic_0001>
module attributes {stable_mosaic.version = 11 : i64} {
  func.func @kernel(%arg0: memref<16x16xf32, #tpu.memory_space<vmem>>, %arg1: memref<2x40xf32, #tpu.memory_space<vmem>>, %arg2: memref<57x40xf32, #tpu.memory_space<vmem>>, %arg3: memref<41x8xf32, #tpu.memory_space<vmem>>, %arg4: memref<16x8xf32, #tpu.memory_space<vmem>>, %arg5: memref<2x40xf32, #tpu.memory_space<vmem>>, %arg6: memref<2x8x40xf32, #tpu.memory_space<vmem>>) attributes {dimension_semantics = [], scalar_prefetch = 0 : i64, scratch_operands = 1 : i64, tpu.core_type = #tpu.core_type<tc>} {
    %c0 = arith.constant 0 : index
    %c0_0 = arith.constant 0 : index
    %0 = vector.load %arg2[%c0, %c0_0] : memref<57x40xf32, #tpu.memory_space<vmem>>, vector<16x40xf32>
    %c16 = arith.constant 16 : index
    %c0_1 = arith.constant 0 : index
    %1 = vector.load %arg2[%c16, %c0_1] : memref<57x40xf32, #tpu.memory_space<vmem>>, vector<40x40xf32>
    %c56 = arith.constant 56 : index
    %c0_2 = arith.constant 0 : index
    %2 = vector.load %arg2[%c56, %c0_2] : memref<57x40xf32, #tpu.memory_space<vmem>>, vector<1x40xf32>
    %c0_3 = arith.constant 0 : index
    %c0_4 = arith.constant 0 : index
    %3 = vector.load %arg0[%c0_3, %c0_4] : memref<16x16xf32, #tpu.memory_space<vmem>>, vector<16x16xf32>
    %cst = arith.constant dense<0.000000e+00> : vector<16x40xf32>
    %4 = tpu.matmul %3, %0, %cst {dimension_numbers = #tpu.dot_dimension_numbers<[1], [0], [0], [1], [0, 0, 1, 1], [], []>} : vector<16x16xf32>, vector<16x40xf32>, vector<16x40xf32> -> vector<16x40xf32>
    %5 = vector.broadcast %2 : vector<1x40xf32> to vector<16x40xf32>
    %6 = arith.addf %4, %5 : vector<16x40xf32>
    %7 = vector.shape_cast %6 : vector<16x40xf32> to vector<2x8x40xf32>
    %c0_5 = arith.constant 0 : index
    %c0_6 = arith.constant 0 : index
    %8 = vector.load %arg1[%c0_5, %c0_6] : memref<2x40xf32, #tpu.memory_space<vmem>>, vector<2x40xf32>
    %9 = vector.extract_strided_slice %7 {offsets = [0, 0, 0], sizes = [2, 1, 40], strides = [1, 1, 1]} : vector<2x8x40xf32> to vector<2x1x40xf32>
    %10 = vector.shape_cast %9 : vector<2x1x40xf32> to vector<2x40xf32>
    %cst_7 = arith.constant dense<0.000000e+00> : vector<2x40xf32>
    %11 = tpu.matmul %8, %1, %cst_7 {dimension_numbers = #tpu.dot_dimension_numbers<[1], [0], [0], [1], [0, 0, 1, 1], [], []>} : vector<2x40xf32>, vector<40x40xf32>, vector<2x40xf32> -> vector<2x40xf32>
    %12 = arith.addf %10, %11 : vector<2x40xf32>
    %13 = math.tanh %12 : vector<2x40xf32>
    %14 = vector.shape_cast %13 : vector<2x40xf32> to vector<2x1x40xf32>
    %c0_8 = arith.constant 0 : index
    %c0_9 = arith.constant 0 : index
    %c0_10 = arith.constant 0 : index
    %15 = vector.load %arg6[%c0_8, %c0_9, %c0_10] : memref<2x8x40xf32, #tpu.memory_space<vmem>>, vector<2x1x40xf32>
    tpu.vector_store %arg6[%c0_8, %c0_9, %c0_10], %14 {strides = array<i32>} : memref<2x8x40xf32, #tpu.memory_space<vmem>>, vector<2x1x40xf32>,
    %16 = vector.extract_strided_slice %7 {offsets = [0, 1, 0], sizes = [2, 1, 40], strides = [1, 1, 1]} : vector<2x8x40xf32> to vector<2x1x40xf32>
    %17 = vector.shape_cast %16 : vector<2x1x40xf32> to vector<2x40xf32>
    %cst_11 = arith.constant dense<0.000000e+00> : vector<2x40xf32>
    %18 = tpu.matmul %13, %1, %cst_11 {dimension_numbers = #tpu.dot_dimension_numbers<[1], [0], [0], [1], [0, 0, 1, 1], [], []>} : vector<2x40xf32>, vector<40x40xf32>, vector<2x40xf32> -> vector<2x40xf32>
    %19 = arith.addf %17, %18 : vector<2x40xf32>
    %20 = math.tanh %19 : vector<2x40xf32>
    %21 = vector.shape_cast %20 : vector<2x40xf32> to vector<2x1x40xf32>
    %c0_12 = arith.constant 0 : index
    %c1 = arith.constant 1 : index
    %c0_13 = arith.constant 0 : index
    %22 = vector.load %arg6[%c0_12, %c1, %c0_13] : memref<2x8x40xf32, #tpu.memory_space<vmem>>, vector<2x1x40xf32>
    tpu.vector_store %arg6[%c0_12, %c1, %c0_13], %21 {strides = array<i32>} : memref<2x8x40xf32, #tpu.memory_space<vmem>>, vector<2x1x40xf32>,
    %23 = vector.extract_strided_slice %7 {offsets = [0, 2, 0], sizes = [2, 1, 40], strides = [1, 1, 1]} : vector<2x8x40xf32> to vector<2x1x40xf32>
    %24 = vector.shape_cast %23 : vector<2x1x40xf32> to vector<2x40xf32>
    %cst_14 = arith.constant dense<0.000000e+00> : vector<2x40xf32>
    %25 = tpu.matmul %20, %1, %cst_14 {dimension_numbers = #tpu.dot_dimension_numbers<[1], [0], [0], [1], [0, 0, 1, 1], [], []>} : vector<2x40xf32>, vector<40x40xf32>, vector<2x40xf32> -> vector<2x40xf32>
    %26 = arith.addf %24, %25 : vector<2x40xf32>
    %27 = math.tanh %26 : vector<2x40xf32>
    %28 = vector.shape_cast %27 : vector<2x40xf32> to vector<2x1x40xf32>
    %c0_15 = arith.constant 0 : index
    %c2 = arith.constant 2 : index
    %c0_16 = arith.constant 0 : index
    %29 = vector.load %arg6[%c0_15, %c2, %c0_16] : memref<2x8x40xf32, #tpu.memory_space<vmem>>, vector<2x1x40xf32>
    tpu.vector_store %arg6[%c0_15, %c2, %c0_16], %28 {strides = array<i32>} : memref<2x8x40xf32, #tpu.memory_space<vmem>>, vector<2x1x40xf32>,
    %30 = vector.extract_strided_slice %7 {offsets = [0, 3, 0], sizes = [2, 1, 40], strides = [1, 1, 1]} : vector<2x8x40xf32> to vector<2x1x40xf32>
    %31 = vector.shape_cast %30 : vector<2x1x40xf32> to vector<2x40xf32>
    %cst_17 = arith.constant dense<0.000000e+00> : vector<2x40xf32>
    %32 = tpu.matmul %27, %1, %cst_17 {dimension_numbers = #tpu.dot_dimension_numbers<[1], [0], [0], [1], [0, 0, 1, 1], [], []>} : vector<2x40xf32>, vector<40x40xf32>, vector<2x40xf32> -> vector<2x40xf32>
    %33 = arith.addf %31, %32 : vector<2x40xf32>
    %34 = math.tanh %33 : vector<2x40xf32>
    %35 = vector.shape_cast %34 : vector<2x40xf32> to vector<2x1x40xf32>
    %c0_18 = arith.constant 0 : index
    %c3 = arith.constant 3 : index
    %c0_19 = arith.constant 0 : index
    %36 = vector.load %arg6[%c0_18, %c3, %c0_19] : memref<2x8x40xf32, #tpu.memory_space<vmem>>, vector<2x1x40xf32>
    tpu.vector_store %arg6[%c0_18, %c3, %c0_19], %35 {strides = array<i32>} : memref<2x8x40xf32, #tpu.memory_space<vmem>>, vector<2x1x40xf32>,
    %37 = vector.extract_strided_slice %7 {offsets = [0, 4, 0], sizes = [2, 1, 40], strides = [1, 1, 1]} : vector<2x8x40xf32> to vector<2x1x40xf32>
    %38 = vector.shape_cast %37 : vector<2x1x40xf32> to vector<2x40xf32>
    %cst_20 = arith.constant dense<0.000000e+00> : vector<2x40xf32>
    %39 = tpu.matmul %34, %1, %cst_20 {dimension_numbers = #tpu.dot_dimension_numbers<[1], [0], [0], [1], [0, 0, 1, 1], [], []>} : vector<2x40xf32>, vector<40x40xf32>, vector<2x40xf32> -> vector<2x40xf32>
    %40 = arith.addf %38, %39 : vector<2x40xf32>
    %41 = math.tanh %40 : vector<2x40xf32>
    %42 = vector.shape_cast %41 : vector<2x40xf32> to vector<2x1x40xf32>
    %c0_21 = arith.constant 0 : index
    %c4 = arith.constant 4 : index
    %c0_22 = arith.constant 0 : index
    %43 = vector.load %arg6[%c0_21, %c4, %c0_22] : memref<2x8x40xf32, #tpu.memory_space<vmem>>, vector<2x1x40xf32>
    tpu.vector_store %arg6[%c0_21, %c4, %c0_22], %42 {strides = array<i32>} : memref<2x8x40xf32, #tpu.memory_space<vmem>>, vector<2x1x40xf32>,
    %44 = vector.extract_strided_slice %7 {offsets = [0, 5, 0], sizes = [2, 1, 40], strides = [1, 1, 1]} : vector<2x8x40xf32> to vector<2x1x40xf32>
    %45 = vector.shape_cast %44 : vector<2x1x40xf32> to vector<2x40xf32>
    %cst_23 = arith.constant dense<0.000000e+00> : vector<2x40xf32>
    %46 = tpu.matmul %41, %1, %cst_23 {dimension_numbers = #tpu.dot_dimension_numbers<[1], [0], [0], [1], [0, 0, 1, 1], [], []>} : vector<2x40xf32>, vector<40x40xf32>, vector<2x40xf32> -> vector<2x40xf32>
    %47 = arith.addf %45, %46 : vector<2x40xf32>
    %48 = math.tanh %47 : vector<2x40xf32>
    %49 = vector.shape_cast %48 : vector<2x40xf32> to vector<2x1x40xf32>
    %c0_24 = arith.constant 0 : index
    %c5 = arith.constant 5 : index
    %c0_25 = arith.constant 0 : index
    %50 = vector.load %arg6[%c0_24, %c5, %c0_25] : memref<2x8x40xf32, #tpu.memory_space<vmem>>, vector<2x1x40xf32>
    tpu.vector_store %arg6[%c0_24, %c5, %c0_25], %49 {strides = array<i32>} : memref<2x8x40xf32, #tpu.memory_space<vmem>>, vector<2x1x40xf32>,
    %51 = vector.extract_strided_slice %7 {offsets = [0, 6, 0], sizes = [2, 1, 40], strides = [1, 1, 1]} : vector<2x8x40xf32> to vector<2x1x40xf32>
    %52 = vector.shape_cast %51 : vector<2x1x40xf32> to vector<2x40xf32>
    %cst_26 = arith.constant dense<0.000000e+00> : vector<2x40xf32>
    %53 = tpu.matmul %48, %1, %cst_26 {dimension_numbers = #tpu.dot_dimension_numbers<[1], [0], [0], [1], [0, 0, 1, 1], [], []>} : vector<2x40xf32>, vector<40x40xf32>, vector<2x40xf32> -> vector<2x40xf32>
    %54 = arith.addf %52, %53 : vector<2x40xf32>
    %55 = math.tanh %54 : vector<2x40xf32>
    %56 = vector.shape_cast %55 : vector<2x40xf32> to vector<2x1x40xf32>
    %c0_27 = arith.constant 0 : index
    %c6 = arith.constant 6 : index
    %c0_28 = arith.constant 0 : index
    %57 = vector.load %arg6[%c0_27, %c6, %c0_28] : memref<2x8x40xf32, #tpu.memory_space<vmem>>, vector<2x1x40xf32>
    tpu.vector_store %arg6[%c0_27, %c6, %c0_28], %56 {strides = array<i32>} : memref<2x8x40xf32, #tpu.memory_space<vmem>>, vector<2x1x40xf32>,
    %58 = vector.extract_strided_slice %7 {offsets = [0, 7, 0], sizes = [2, 1, 40], strides = [1, 1, 1]} : vector<2x8x40xf32> to vector<2x1x40xf32>
    %59 = vector.shape_cast %58 : vector<2x1x40xf32> to vector<2x40xf32>
    %cst_29 = arith.constant dense<0.000000e+00> : vector<2x40xf32>
    %60 = tpu.matmul %55, %1, %cst_29 {dimension_numbers = #tpu.dot_dimension_numbers<[1], [0], [0], [1], [0, 0, 1, 1], [], []>} : vector<2x40xf32>, vector<40x40xf32>, vector<2x40xf32> -> vector<2x40xf32>
    %61 = arith.addf %59, %60 : vector<2x40xf32>
    %62 = math.tanh %61 : vector<2x40xf32>
    %63 = vector.shape_cast %62 : vector<2x40xf32> to vector<2x1x40xf32>
    %c0_30 = arith.constant 0 : index
    %c7 = arith.constant 7 : index
    %c0_31 = arith.constant 0 : index
    %64 = vector.load %arg6[%c0_30, %c7, %c0_31] : memref<2x8x40xf32, #tpu.memory_space<vmem>>, vector<2x1x40xf32>
    tpu.vector_store %arg6[%c0_30, %c7, %c0_31], %63 {strides = array<i32>} : memref<2x8x40xf32, #tpu.memory_space<vmem>>, vector<2x1x40xf32>,
    %c0_32 = arith.constant 0 : index
    %c0_33 = arith.constant 0 : index
    %65 = vector.load %arg5[%c0_32, %c0_33] : memref<2x40xf32, #tpu.memory_space<vmem>>, vector<2x40xf32>
    tpu.vector_store %arg5[%c0_32, %c0_33], %62 {strides = array<i32>} : memref<2x40xf32, #tpu.memory_space<vmem>>, vector<2x40xf32>,
    %c0_34 = arith.constant 0 : index
    %c0_35 = arith.constant 0 : index
    %66 = vector.load %arg3[%c0_34, %c0_35] : memref<41x8xf32, #tpu.memory_space<vmem>>, vector<40x8xf32>
    %c40 = arith.constant 40 : index
    %c0_36 = arith.constant 0 : index
    %67 = vector.load %arg3[%c40, %c0_36] : memref<41x8xf32, #tpu.memory_space<vmem>>, vector<1x8xf32>
    %c0_37 = arith.constant 0 : index
    %c0_38 = arith.constant 0 : index
    %c0_39 = arith.constant 0 : index
    %68 = vector.load %arg6[%c0_37, %c0_38, %c0_39] : memref<2x8x40xf32, #tpu.memory_space<vmem>>, vector<2x8x40xf32>
    %69 = vector.shape_cast %68 : vector<2x8x40xf32> to vector<16x40xf32>
    %cst_40 = arith.constant dense<0.000000e+00> : vector<16x8xf32>
    %70 = tpu.matmul %69, %66, %cst_40 {dimension_numbers = #tpu.dot_dimension_numbers<[1], [0], [0], [1], [0, 0, 1, 1], [], []>} : vector<16x40xf32>, vector<40x8xf32>, vector<16x8xf32> -> vector<16x8xf32>
    %71 = vector.broadcast %67 : vector<1x8xf32> to vector<16x8xf32>
    %72 = arith.addf %70, %71 : vector<16x8xf32>
    %c0_41 = arith.constant 0 : index
    %c0_42 = arith.constant 0 : index
    %73 = vector.load %arg4[%c0_41, %c0_42] : memref<16x8xf32, #tpu.memory_space<vmem>>, vector<16x8xf32>
    tpu.vector_store %arg4[%c0_41, %c0_42], %72 {strides = array<i32>} : memref<16x8xf32, #tpu.memory_space<vmem>>, vector<16x8xf32>,
    return
  }
}

</mosaic_0001>

<bundles_post_ra>
// kernel: net_forward.1
= control target key start
LH: loop header
LB: loop body
LE: loop exit
PB: predicated region body
PF: predicated region fallthrough
CT: control target
= control target key end

     0   :  { %vm34_vm0 = vcmask 130048   ;;  %v1261_v3 = vmov 0.0|0.0   ;;  %vm1262_vm1 = vmmov 0   ;;  %v1263_v10 = vmov 0.0   ;;  %s1476_s0 = inlined_call_operand.vmem [shape: f32[16,16], index: 0, kind: input, shape index: {}]   ;;  %s1477_s1 = inlined_call_operand.vmem [shape: f32[2,40], index: 1, kind: input, shape index: {}]   ;;  %s1478_s2 = inlined_call_operand.vmem [shape: f32[57,40], index: 2, kind: input, shape index: {}]   ;;  %s1479_s3 = inlined_call_operand.vmem [shape: f32[41,8], index: 3, kind: input, shape index: {}]   ;;  %s1480_s4 = inlined_call_operand.vmem [shape: f32[16,8], index: 4, kind: output, shape index: {0}]   ;;  %s1481_s5 = inlined_call_operand.hbm [shape: f32[2,40], index: 5, kind: output, shape index: {1}]  }
   0x1   :  { %v22_v0 = vld [vmem:[%s1478_s2 + $0x10] sm:$0xff]  ;;  %v23_v1 = vld [vmem:[%s1478_s2 + $0x18] sm:$0xff]  ;;  %v20_v2 = vld [vmem:[%s1478_s2] sm:$0xff]  ;;  %1145 = vmatprep.subr.bf16.mxu1 %v1261_v3  ;;  %1034 = vmatprep.mubr.msk.f32.mxu1 %vm1262_vm1, %v1263_v10 }
   0x2   :  { %v1305_v4 = vpack.c.bf16 %v23_v1, %v22_v0  ;;  %v21_v5 = vld [vmem:[%s1478_s2 + $0x8] sm:$0xff]  ;;  %v24_v6 = vld [vmem:[%s1478_s2 + $0x20] sm:$0xff] }
   0x3   :  { %v25_v7 = vld [vmem:[%s1478_s2 + $0x28] sm:$0xff]  ;;  %v1141_v8 = vpack.c.bf16 %v21_v5, %v20_v2  ;;  %v28_v9 = vld [vmem:[%s1476_s0] sm:$0xff] }
   0x4   :  { %1147 = vmatpush3.bf16.msra.mxu1 %v1305_v4  ;;  %v1322_v11 = vpack.c.bf16 %v25_v7, %v24_v6  ;;  %1021 = vmatprep.mubr.msk.f32.mxu0 %vm34_vm0, %v28_v9 }
   0x5   :  { %11 = vsyncpa [#allocation4], 0  ;;  %1142 = vmatprep.subr.bf16.mxu0 %v1141_v8  ;;  %1148 = vmatprep.subr.bf16.mxu1 %v1261_v3  ;;  %v29_v12 = vld [vmem:[%s1476_s0 + $0x8] sm:$0xff]  ;;  %v1336_v13 = vld [vmem:[%s1478_s2 + $0x30] sm:$0xff]  ;;  %vm117_vm2 = vcmask 326656   ;;  %vm199_vm3 = vcmask 319488  }
   0x6   :  { %1144 = vmatpush3.bf16.msra.mxu0 %v1141_v8  ;;  %v116_v14 = vld [vmem:[%s1477_s1] sm:$0x3]  ;;  %v944_v15 = vld [vmem:[%s1478_s2 + $0x38] ss:$0 sm:$0xff]  ;;  %vm205_vm4 = vcmask 1041409   ;;  %vm287_vm5 = vcmask 320513  }
   0x7   :  { %1151 = vmatprep.subr.bf16.mxu0 %v1261_v3  ;;  %vm375_vm6 = vcmask 321538   ;;  %vm464_vm7 = vcmask 322563   ;;  %vm553_vm8 = vcmask 323588   ;;  %vm642_vm9 = vcmask 324613   ;;  %s1264_s22 = smov [#allocation3]  }
   0x8   :  { %1150 = vmatpush3.bf16.msra.mxu1 %v1322_v11  ;;  %vm731_vm10 = vcmask 325638   ;;  %vm820_vm11 = vcmask 326663   ;;  %s934_s23 = sshll.u32 %s1264_s22, 4  ;;  %s935_s23 = int_to_ptr.vmem [resolvable:$true] %s934_s23 }
   0x9   :  { %1022 = vmatmul.mubr.msk.f32.vlgmr.msra.gmra.mrb[0].mxu0 %vm34_vm0, %v29_v12  ;;  %1032 = vmatprep.subr.mxu1 %v1263_v10  ;;  %s1237_s24 = scalar_lea.vmem %s935_s23, 32  ;;  %p1242_p1 = scmp.lt.s32.totalorder %s935_s23, %s935_s23 }
   0xa   :  { %1153 = vmatpush3.bf16.msra.mxu0 %v1305_v4  ;;  %1047 = vmatprep.mubr.msk.f32.mxu0 %vm1262_vm1, %v1263_v10  ;;  %p1238_p0 = scmp.ne.s32.totalorder %s935_s23, %s1237_s24  ;;  %p1243_p2 = scmp.lt.s32.totalorder %s1237_s24, %s1237_s24 }
   0xb   :  { %1154 = vmatprep.subr.bf16.mxu0 %v1261_v3 }
   0xc   :  { %1033 = vmatpush3.msra.mxu1 %v1336_v13  ;;  %p1244_p3 = por %p1243_p2, %p1242_p1 }
   0xd   :  { %1035 = vmatmul.mubr.msk.f32.vlgmr.msra.gmra.mrb[0].mxu1 %vm117_vm2, %v116_v14  ;;  %1157 = vmatprep.subr.bf16.mxu1 %v1261_v3 }
   0xe   :  { %1156 = vmatpush3.bf16.msra.mxu0 %v1322_v11  ;;  %1159 = vmatpush3.bf16.msra.mxu1 %v1305_v4  ;;  %p1245_p4 = pnand %p1244_p3, %p1238_p0 }
   0xf   :  { %1045 = vmatprep.subr.mxu0 %v1263_v10  ;;  %1160 = vmatprep.subr.bf16.mxu1 %v1261_v3 }
  0x10   :  { %1060 = vmatprep.mubr.msk.f32.mxu1 %vm1262_vm1, %v1263_v10 }
  0x12   :  { %1046 = vmatpush3.msra.mxu0 %v1336_v13  ;;  %1162 = vmatpush3.bf16.msra.mxu1 %v1322_v11 }
  0x13   :  { %1058 = vmatprep.subr.mxu1 %v1263_v10  ;;  %1163 = vmatprep.subr.bf16.mxu0 %v1261_v3 }
  0x16   :  { %1059 = vmatpush3.msra.mxu1 %v1336_v13 }
  0x17   :  { %1169 = vmatprep.subr.bf16.mxu1 %v1261_v3 }
  0xdc   :  { %v1023_v16 = vpop.f32.mrb[0].mxu0 }
  0xdd   :  { %v107_v17 = vpop.f32.mrb[1].mxu0  ;;  %v1365_v19 = vadd.f32 %v1023_v16, %v944_v15 }
  0xde   :  { %v1363_v18 = vadd.f32 %v944_v15, %v107_v17 }
  0xe0   :  { %v187_v20 = vpop.f32.mrb[0].mxu1 }
  0xe1   :  { %v192_v21 = vrot.slane %v187_v20, 1  ;;  %v195_v22 = vadd.f32 %v187_v20, %v1363_v18  ;;  %v1036_v23 = vpop.f32.mrb[1].mxu1 }
  0xe3   :  { %v196_v24 = vadd.f32 %v192_v21, %v1365_v19  ;;  %1205 = vtanh.f32 %v195_v22 }
  0xe5   :  { %1207 = vtanh.f32 %v196_v24 }
  0xed   :  { %v1206_v25 = vpop.eup %1205 }
  0xee   :  { %200 = vst.msk [vmem:[#allocation2] sm:$0x1] %vm199_vm3, %v1206_v25 }
  0xef   :  { %v1208_v26 = vpop.eup %1207 }
  0xf0   :  { %201 = vst.msk [vmem:[#allocation2 + $0x8] sm:$0x1] %vm199_vm3, %v1208_v26  ;;  %v204_v27 = vrot.slane %v1208_v26, 7 }
  0xf2   :  { %v206_v28 = vsel %vm205_vm4, %v204_v27, %v1206_v25 }
  0xf3   :  { %1048 = vmatmul.mubr.msk.f32.vlgmr.msra.gmra.mrb[2].mxu0 %vm117_vm2, %v206_v28 }
  0xf4   :  { %1165 = vmatpush3.bf16.msra.mxu0 %v1305_v4  ;;  %1073 = vmatprep.mubr.msk.f32.mxu0 %vm1262_vm1, %v1263_v10 }
  0xf5   :  { %1166 = vmatprep.subr.bf16.mxu0 %v1261_v3 }
  0xf8   :  { %1168 = vmatpush3.bf16.msra.mxu0 %v1322_v11 }
  0xf9   :  { %1071 = vmatprep.subr.mxu0 %v1263_v10 }
  0xfc   :  { %1072 = vmatpush3.msra.mxu0 %v1336_v13 }
  0xfd   :  { %1175 = vmatprep.subr.bf16.mxu0 %v1261_v3 }
 0x1c6   :  { %v275_v29 = vpop.f32.mrb[2].mxu0 }
 0x1c7   :  { %v280_v30 = vrot.slane %v275_v29, 7  ;;  %v284_v31 = vadd.f32 %v275_v29, %v1365_v19  ;;  %v1049_v32 = vpop.f32.mrb[3].mxu0 }
 0x1c8   :  { %v831_v32 = vld [vmem:[%s1479_s3 + $0x8] sm:$0xff] }
 0x1c9   :  { %v283_v33 = vadd.f32 %v280_v30, %v1363_v18  ;;  %1209 = vtanh.f32 %v284_v31  ;;  %v830_v31 = vld [vmem:[%s1479_s3] sm:$0xff] }
 0x1cb   :  { %1211 = vtanh.f32 %v283_v33  ;;  %v1193_v33 = vpack.c.bf16 %v831_v32, %v830_v31 }
 0x1d3   :  { %v1210_v34 = vpop.eup %1209 }
 0x1d4   :  { %289 = vst.msk [vmem:[#allocation2 + $0x8] sm:$0x2] %vm287_vm5, %v1210_v34 }
 0x1d5   :  { %v1212_v35 = vpop.eup %1211 }
 0x1d6   :  { %288 = vst.msk [vmem:[#allocation2] sm:$0x2] %vm287_vm5, %v1212_v35  ;;  %v292_v36 = vrot.slane %v1212_v35, 1  ;;  %v833_v35 = vld [vmem:[%s1479_s3 + $0x18] sm:$0xff] }
 0x1d8   :  { %v293_v37 = vsel %vm205_vm4, %v1210_v34, %v292_v36  ;;  %v832_v34 = vld [vmem:[%s1479_s3 + $0x10] sm:$0xff] }
 0x1d9   :  { %1061 = vmatmul.mubr.msk.f32.vlgmr.msra.gmra.mrb[2].mxu1 %vm117_vm2, %v293_v37  ;;  %v1197_v36 = vpack.c.bf16 %v833_v35, %v832_v34  ;;  %v834_v37 = vld [vmem:[%s1479_s3 + $0x20] sm:$0xff] }
 0x1da   :  { %1171 = vmatpush3.bf16.msra.mxu1 %v1305_v4  ;;  %1086 = vmatprep.mubr.msk.f32.mxu1 %vm1262_vm1, %v1263_v10 }
 0x1db   :  { %1172 = vmatprep.subr.bf16.mxu1 %v1261_v3 }
 0x1de   :  { %1174 = vmatpush3.bf16.msra.mxu1 %v1322_v11 }
 0x1df   :  { %1084 = vmatprep.subr.mxu1 %v1263_v10 }
 0x1e2   :  { %1085 = vmatpush3.msra.mxu1 %v1336_v13 }
 0x1e3   :  { %1181 = vmatprep.subr.bf16.mxu1 %v1261_v3 }
 0x2ac   :  { %v362_v38 = vpop.f32.mrb[2].mxu1 }
 0x2ad   :  { %v367_v39 = vrot.slane %v362_v38, 6  ;;  %v368_v40 = vrot.slane %v362_v38, 7  ;;  %v1062_v41 = vpop.f32.mrb[3].mxu1 }
 0x2af   :  { %v371_v42 = vadd.f32 %v367_v39, %v1363_v18  ;;  %v372_v43 = vadd.f32 %v368_v40, %v1365_v19 }
 0x2b1   :  { %1213 = vtanh.f32 %v371_v42 }
 0x2b2   :  { %1215 = vtanh.f32 %v372_v43 }
 0x2bb   :  { %v1214_v44 = vpop.eup %1213 }
 0x2bc   :  { %v1216_v45 = vpop.eup %1215  ;;  %376 = vst.msk [vmem:[#allocation2] sm:$0x4] %vm375_vm6, %v1214_v44  ;;  %v380_v46 = vrot.slane %v1214_v44, 2 }
 0x2bd   :  { %377 = vst.msk [vmem:[#allocation2 + $0x8] sm:$0x4] %vm375_vm6, %v1216_v45  ;;  %v381_v47 = vrot.slane %v1216_v45, 1 }
 0x2bf   :  { %v382_v48 = vsel %vm205_vm4, %v381_v47, %v380_v46 }
 0x2c0   :  { %1074 = vmatmul.mubr.msk.f32.vlgmr.msra.gmra.mrb[4].mxu0 %vm117_vm2, %v382_v48 }
 0x2c1   :  { %1177 = vmatpush3.bf16.msra.mxu0 %v1305_v4  ;;  %1099 = vmatprep.mubr.msk.f32.mxu0 %vm1262_vm1, %v1263_v10 }
 0x2c2   :  { %1178 = vmatprep.subr.bf16.mxu0 %v1261_v3 }
 0x2c5   :  { %1180 = vmatpush3.bf16.msra.mxu0 %v1322_v11 }
 0x2c6   :  { %1097 = vmatprep.subr.mxu0 %v1263_v10 }
 0x2c9   :  { %1098 = vmatpush3.msra.mxu0 %v1336_v13 }
 0x2ca   :  { %1187 = vmatprep.subr.bf16.mxu0 %v1261_v3 }
 0x393   :  { %v451_v49 = vpop.f32.mrb[4].mxu0 }
 0x394   :  { %v456_v50 = vrot.slane %v451_v49, 5  ;;  %v457_v51 = vrot.slane %v451_v49, 6  ;;  %v1075_v52 = vpop.f32.mrb[5].mxu0 }
 0x396   :  { %v460_v53 = vadd.f32 %v456_v50, %v1363_v18  ;;  %v461_v54 = vadd.f32 %v457_v51, %v1365_v19 }
 0x398   :  { %1217 = vtanh.f32 %v460_v53 }
 0x399   :  { %1219 = vtanh.f32 %v461_v54 }
 0x3a2   :  { %v1218_v55 = vpop.eup %1217 }
 0x3a3   :  { %v1220_v56 = vpop.eup %1219  ;;  %465 = vst.msk [vmem:[#allocation2] sm:$0x8] %vm464_vm7, %v1218_v55  ;;  %v469_v57 = vrot.slane %v1218_v55, 3 }
 0x3a4   :  { %466 = vst.msk [vmem:[#allocation2 + $0x8] sm:$0x8] %vm464_vm7, %v1220_v56  ;;  %v470_v58 = vrot.slane %v1220_v56, 2 }
 0x3a6   :  { %v471_v59 = vsel %vm205_vm4, %v470_v58, %v469_v57 }
 0x3a7   :  { %1087 = vmatmul.mubr.msk.f32.vlgmr.msra.gmra.mrb[4].mxu1 %vm117_vm2, %v471_v59 }
 0x3a8   :  { %1183 = vmatpush3.bf16.msra.mxu1 %v1305_v4  ;;  %1112 = vmatprep.mubr.msk.f32.mxu1 %vm1262_vm1, %v1263_v10 }
 0x3a9   :  { %1184 = vmatprep.subr.bf16.mxu1 %v1261_v3 }
 0x3ac   :  { %1186 = vmatpush3.bf16.msra.mxu1 %v1322_v11 }
 0x3ad   :  { %1110 = vmatprep.subr.mxu1 %v1263_v10 }
 0x3b0   :  { %1111 = vmatpush3.msra.mxu1 %v1336_v13 }
 0x3b1   :  { %1194 = vmatprep.subr.bf16.mxu1 %v1193_v33 }
 0x47a   :  { %v540_v60 = vpop.f32.mrb[4].mxu1 }
 0x47b   :  { %v545_v61 = vrot.slane %v540_v60, 4  ;;  %v546_v62 = vrot.slane %v540_v60, 5  ;;  %v1088_v63 = vpop.f32.mrb[5].mxu1 }
 0x47d   :  { %v549_v0 = vadd.f32 %v545_v61, %v1363_v18  ;;  %v550_v1 = vadd.f32 %v546_v62, %v1365_v19 }
 0x47f   :  { %1221 = vtanh.f32 %v549_v0 }
 0x480   :  { %1223 = vtanh.f32 %v550_v1 }
 0x489   :  { %v1222_v2 = vpop.eup %1221 }
 0x48a   :  { %v1224_v5 = vpop.eup %1223  ;;  %554 = vst.msk [vmem:[#allocation2] sm:$0x10] %vm553_vm8, %v1222_v2  ;;  %v558_v6 = vrot.slane %v1222_v2, 4 }
 0x48b   :  { %555 = vst.msk [vmem:[#allocation2 + $0x8] sm:$0x10] %vm553_vm8, %v1224_v5  ;;  %v559_v7 = vrot.slane %v1224_v5, 3 }
 0x48d   :  { %v560_v8 = vsel %vm205_vm4, %v559_v7, %v558_v6 }
 0x48e   :  { %1100 = vmatmul.mubr.msk.f32.vlgmr.msra.gmra.mrb[6].mxu0 %vm117_vm2, %v560_v8 }
 0x48f   :  { %1189 = vmatpush3.bf16.msra.mxu0 %v1305_v4  ;;  %1125 = vmatprep.mubr.msk.f32.mxu0 %vm1262_vm1, %v1263_v10 }
 0x490   :  { %1190 = vmatprep.subr.bf16.mxu0 %v1261_v3 }
 0x493   :  { %1192 = vmatpush3.bf16.msra.mxu0 %v1322_v11 }
 0x494   :  { %1123 = vmatprep.subr.mxu0 %v1263_v10 }
 0x497   :  { %1124 = vmatpush3.msra.mxu0 %v1336_v13 }
 0x561   :  { %v629_v9 = vpop.f32.mrb[6].mxu0 }
 0x562   :  { %v634_v12 = vrot.slane %v629_v9, 3  ;;  %v635_v14 = vrot.slane %v629_v9, 4  ;;  %v1101_v15 = vpop.f32.mrb[7].mxu0 }
 0x564   :  { %v638_v16 = vadd.f32 %v634_v12, %v1363_v18  ;;  %v639_v17 = vadd.f32 %v635_v14, %v1365_v19 }
 0x566   :  { %1225 = vtanh.f32 %v638_v16 }
 0x567   :  { %1227 = vtanh.f32 %v639_v17 }
 0x570   :  { %v1226_v4 = vpop.eup %1225 }
 0x571   :  { %v1228_v20 = vpop.eup %1227  ;;  %643 = vst.msk [vmem:[#allocation2] sm:$0x20] %vm642_vm9, %v1226_v4  ;;  %v647_v3 = vrot.slane %v1226_v4, 5 }
 0x572   :  { %644 = vst.msk [vmem:[#allocation2 + $0x8] sm:$0x20] %vm642_vm9, %v1228_v20  ;;  %v648_v11 = vrot.slane %v1228_v20, 4 }
 0x574   :  { %v649_v10 = vsel %vm205_vm4, %v648_v11, %v647_v3 }
 0x575   :  { %1113 = vmatmul.mubr.msk.f32.vlgmr.msra.gmra.mrb[6].mxu1 %vm117_vm2, %v649_v10 }
 0x576   :  { %1196 = vmatpush3.bf16.msra.mxu1 %v1193_v33 }
 0x577   :  { %1198 = vmatprep.subr.bf16.mxu1 %v1197_v36 }
 0x57a   :  { %1200 = vmatpush3.bf16.msra.mxu1 %v1197_v36 }
 0x57b   :  { %1136 = vmatprep.subr.mxu1 %v834_v37 }
 0x57e   :  { %1137 = vmatpush3.msra.mxu1 %v834_v37 }
 0x648   :  { %v718_v13 = vpop.f32.mrb[6].mxu1 }
 0x649   :  { %v723_v21 = vrot.slane %v718_v13, 2  ;;  %v724_v22 = vrot.slane %v718_v13, 3  ;;  %v1114_v23 = vpop.f32.mrb[7].mxu1 }
 0x64b   :  { %v727_v24 = vadd.f32 %v723_v21, %v1363_v18  ;;  %v728_v25 = vadd.f32 %v724_v22, %v1365_v19 }
 0x64d   :  { %1229 = vtanh.f32 %v727_v24 }
 0x64e   :  { %1231 = vtanh.f32 %v728_v25 }
 0x657   :  { %v1230_v26 = vpop.eup %1229 }
 0x658   :  { %v1232_v27 = vpop.eup %1231  ;;  %732 = vst.msk [vmem:[#allocation2] sm:$0x40] %vm731_vm10, %v1230_v26  ;;  %v736_v28 = vrot.slane %v1230_v26, 6 }
 0x659   :  { %733 = vst.msk [vmem:[#allocation2 + $0x8] sm:$0x40] %vm731_vm10, %v1232_v27  ;;  %v737_v29 = vrot.slane %v1232_v27, 5 }
 0x65b   :  { %v738_v30 = vsel %vm205_vm4, %v737_v29, %v736_v28 }
 0x65c   :  { %1126 = vmatmul.mubr.msk.f32.vlgmr.msra.gmra.mrb[8].mxu0 %vm117_vm2, %v738_v30 }
 0x72f   :  { %v807_v38 = vpop.f32.mrb[8].mxu0 }
 0x730   :  { %v812_v39 = vrot.slane %v807_v38, 1  ;;  %v813_v40 = vrot.slane %v807_v38, 2  ;;  %v1127_v41 = vpop.f32.mrb[9].mxu0 }
 0x732   :  { %v816_v42 = vadd.f32 %v812_v39, %v1363_v18  ;;  %v817_v43 = vadd.f32 %v813_v40, %v1365_v19 }
 0x734   :  { %1233 = vtanh.f32 %v816_v42 }
 0x735   :  { %1235 = vtanh.f32 %v817_v43 }
 0x73e   :  { %v1234_v44 = vpop.eup %1233 }
 0x73f   :  { %v1236_v45 = vpop.eup %1235  ;;  %821 = vst.msk [vmem:[#allocation2] sm:$0x80] %vm820_vm11, %v1234_v44  ;;  %828 = vst.msk [vmem:[#allocation3 - $0x7] sm:$0x80] %vm820_vm11, %v1234_v44 }
 0x740   :  { %822 = vst.msk [vmem:[#allocation2 + $0x8] sm:$0x80] %vm820_vm11, %v1236_v45  ;;  %v825_v46 = vrot.slane %v1236_v45, 7 }
 0x742   :  { %829 = vst.msk [vmem:[#allocation3 + $0x1] sm:$0x1] %vm199_vm3, %v825_v46 }
 0x746   :  { %v836_v47 = vld [vmem:[#allocation2] sm:$0xff] }
 0x747   :  { %1138 = vmatprep.mubr.msk.f32.mxu1 %vm117_vm2, %v836_v47  ;;  %v837_v48 = vld [vmem:[#allocation2 + $0x8] sm:$0xff] }
 0x748   :  { %1139 = vmatmul.mubr.msk.f32.vlgmr.msra.gmra.mrb[8].mxu1 %vm117_vm2, %v837_v48 }
 0x749   :  { %1248 = shalt.err (!%p1245_p4)
}
 0x74a   :  { %s1249_s27 = scalar_lea.hbm %s1481_s5, 32 }
 0x74b   :  { %p1250_p5 = scmp.ne.s32.totalorder %s1481_s5, %s1249_s27  ;;  %p1253_p6 = scmp.lt.u32.totalorder %s1249_s27, %s1481_s5 }
 0x74d   :  { %p1255_p7 = pnand %p1253_p6, %p1250_p5 }
 0x74f   :  { %1258 = shalt.err (!%p1255_p7)
}
 0x750   :  { %937 = dma.vmem_to_hbm [thread:$0]  %s935_s23, 32, %s1481_s5, [#allocation4]   ;;  %v955_v18 = vld [vmem:[%s1479_s3 + $0x28] ss:$0 sm:$0xff]  ;;  %vm923_vm12 = vcmask 64512  }
 0x81b   :  { %v1140_v19 = vpop.f32.mrb[8].mxu1 }
 0x81c   :  { %v920_v49 = vadd.f32 %v1140_v19, %v955_v18  ;;  %v914_v50 = vpop.f32.mrb[9].mxu1 }
 0x81d   :  { %v915_v51 = vadd.f32 %v955_v18, %v914_v50 }
 0x81e   :  { %925 = vst.msk [vmem:[%s1480_s4 + $0x8] sm:$0xff] %vm923_vm12, %v920_v49 }
 0x81f   :  { %924 = vst.msk [vmem:[%s1480_s4] sm:$0xff] %vm923_vm12, %v915_v51 }
 0x820   :  { %1259 = dma.done.wait [#allocation4], 32  }
 0x821   :  { %1260 = vsyncadd [#allocation4], 4294967264 }
 0x822   :  { %943 = vsyncpa [#allocation4], 1 }

</bundles_post_ra>
